<compile_context>
chip_gen: v7x
topology: tpu7x:2x2x1
jax: 0.10.0
libtpu: 0.0.40
codegen_flags: <defaults>
</compile_context>

<pallas_src>
import functools

import jax
import jax.numpy as jnp
from jax.experimental import pallas as pl
from jax.experimental.pallas import tpu as pltpu


def _round_up(x, m):
    return ((x + m - 1) // m) * m


def _default_tile_b(B, A, n_big_streams):
    """Pick a batch tile: big enough to pipeline well, small enough for v7x VMEM."""
    budget = 8 << 20                       # ~8 MiB of input tiles per buffer set
    per_row = n_big_streams * A * 4 + 3 * 4 + 4
    rows = max(8, budget // max(per_row, 1))
    rows = min(rows, 2048, _round_up(B, 8))
    rows = max(8, (rows // 8) * 8)
    return rows


def _custom_loss_kernel(*refs, estimator_type, k, true_b, tile_b, return_mean):
    if estimator_type == 'RegressionExtrapolation':
        out_ref, act_ref, delta_ref, prop_ref, all_prop_ref, rr_ref = refs[:6]
        rest = refs[6:]
    else:
        out_ref, act_ref, delta_ref, prop_ref = refs[:4]
        rest = refs[4:]

    out = out_ref[...]                          # (tile_b, A) f32
    action = act_ref[...]                       # (tile_b, 1) i32
    delta = delta_ref[...]                      # (tile_b, 1) f32
    prop = prop_ref[...]                        # (tile_b, 1) f32
    tb, A = out.shape

    risk = -1.0 * delta

    # Gather output[i, action[i]] via one-hot (VPU-friendly, no gather/scatter).
    col_ids = jax.lax.broadcasted_iota(jnp.int32, (tb, A), 1)
    onehot = (col_ids == action).astype(out.dtype)           # (tile_b, A)
    chosen = jnp.sum(out * onehot, axis=-1, keepdims=True)   # (tile_b, 1)

    # Divide on the EUP slot instead of VALU.
    ratio = chosen * pl.reciprocal(prop, approx=False)       # (tile_b, 1)

    if estimator_type == 'IPS':
        loss = risk * ratio
    elif estimator_type == 'RegressionExtrapolation':
        all_prop = all_prop_ref[...]                         # (tile_b, A)
        regressed = rr_ref[...]                              # (1, A) or (tile_b, A)
        unsupp = (all_prop == 0.0).astype(out.dtype)
        corr = jnp.sum(regressed * out * unsupp, axis=-1, keepdims=True)
        loss = risk * ratio - corr
    elif estimator_type == 'PolicyRestriction':
        loss = (risk + k) * ratio - k
    else:
        raise ValueError(f"unknown estimator_type {estimator_type}")

    if return_mean:
        mean_ref, acc_ref = rest
        pid = pl.program_id(0)
        # Mask rows padded past the true batch size.
        row_ids = pid * tile_b + jax.lax.broadcasted_iota(jnp.int32, (tb, 1), 0)
        valid = (row_ids < true_b).astype(loss.dtype)
        tile_sum = jnp.sum(loss * valid).reshape(1, 1)

        @pl.when(pid == 0)
        def _():
            acc_ref[...] = jnp.zeros_like(acc_ref)

        acc_ref[...] += tile_sum

        @pl.when(pid == pl.num_programs(0) - 1)
        def _():
            mean_ref[...] = acc_ref[...] * (1.0 / true_b)
    else:
        (loss_ref,) = rest
        loss_ref[...] = loss                                  # (tile_b, 1)


def custom_loss(output, y, action, delta, prop, all_prop, regressed_rewards,
                *, hyper_params, return_mean=True, tile_b=None):
    """JAX/Pallas equivalent of CustomLoss.forward (y is unused, as in PyTorch)."""
    del y
    est = hyper_params['estimator_type']
    k = float(hyper_params['k'])
    B, A = output.shape
    f32 = jnp.float32

    # Number of (tile_b, A)-wide input streams (for tile sizing / vmem budget).
    n_big = 1 if est != 'RegressionExtrapolation' else 3

    if tile_b is None:
        tile_b = _default_tile_b(B, A, n_big)
    tile_b = max(8, _round_up(int(tile_b), 8))
    B_pad = _round_up(B, tile_b)
    num_tiles = B_pad // tile_b

    def pad_rows(x, value):
        if B_pad == B:
            return x
        widths = [(0, B_pad - B)] + [(0, 0)] * (x.ndim - 1)
        return jnp.pad(x, widths, constant_values=value)

    output_p = pad_rows(output.astype(f32), 0.0)
    action_p = pad_rows(action.astype(jnp.int32).reshape(B, 1), 0)
    delta_p = pad_rows(delta.astype(f32).reshape(B, 1), 0.0)
    prop_p = pad_rows(prop.astype(f32).reshape(B, 1), 1.0)   # avoid div-by-zero on pad rows

    in_arrays = [output_p, action_p, delta_p, prop_p]
    in_specs = [
        pl.BlockSpec((tile_b, A), lambda i: (i, 0)),
        pl.BlockSpec((tile_b, 1), lambda i: (i, 0)),
        pl.BlockSpec((tile_b, 1), lambda i: (i, 0)),
        pl.BlockSpec((tile_b, 1), lambda i: (i, 0)),
    ]
    rr_extra_bytes = 0

    if est == 'RegressionExtrapolation':
        # pad all_prop with 1.0 -> unsupported-action mask is 0 on padded rows
        all_prop_p = pad_rows(all_prop.astype(f32), 1.0)
        in_arrays.append(all_prop_p)
        in_specs.append(pl.BlockSpec((tile_b, A), lambda i: (i, 0)))

        rr = jnp.asarray(regressed_rewards, f32)
        if rr.ndim == 1 and rr.shape == (A,) or (rr.ndim == 2 and rr.shape == (1, A)):
            # Keep it as one resident (1, A) VMEM block; no HBM-materialized broadcast.
            in_arrays.append(rr.reshape(1, A))
            in_specs.append(pl.BlockSpec((1, A), lambda i: (0, 0)))
            rr_extra_bytes = A * 4
            n_big = 2
        else:
            rr_full = jnp.broadcast_to(rr, (B, A)).astype(f32)
            in_arrays.append(pad_rows(rr_full, 0.0))
            in_specs.append(pl.BlockSpec((tile_b, A), lambda i: (i, 0)))

    kernel = functools.partial(
        _custom_loss_kernel,
        estimator_type=est, k=k, true_b=B, tile_b=tile_b, return_mean=return_mean)

    if return_mean:
        out_shape = jax.ShapeDtypeStruct((1, 1), f32)
        out_specs = pl.BlockSpec((1, 1), lambda i: (0, 0))      # resident accumulator output
        scratch_shapes = [pltpu.VMEM((1, 1), f32)]
        dims = ("arbitrary",)                                   # scratch carried across tiles
        out_tile_bytes = 4
    else:
        out_shape = jax.ShapeDtypeStruct((B_pad, 1), f32)
        out_specs = pl.BlockSpec((tile_b, 1), lambda i: (i, 0))
        scratch_shapes = []
        dims = ("parallel",)                                    # independent tiles
        out_tile_bytes = tile_b * 4

    in_tile_bytes = n_big * tile_b * A * 4 + 3 * tile_b * 4 + tile_b * 4 + rr_extra_bytes
    vmem_limit = int(min(100 << 20,
                         max(8 << 20, 2 * (in_tile_bytes + out_tile_bytes) + (2 << 20))))

    res = pl.pallas_call(
        kernel,
        out_shape=out_shape,
        grid_spec=pltpu.PrefetchScalarGridSpec(
            num_scalar_prefetch=0,
            grid=(num_tiles,),
            in_specs=in_specs,
            out_specs=out_specs,
            scratch_shapes=scratch_shapes),
        compiler_params=pltpu.CompilerParams(
            dimension_semantics=dims,
            vmem_limit_bytes=vmem_limit),
    )(*in_arrays)

    if return_mean:
        return res[0, 0]
    # TODO(synk): per-sample output is stored as (B, 1) (lane-width-1 masked stores);
    # a lane-dense (num_tiles, TILE_B) layout would save store bandwidth for small A.
    return res.reshape(B_pad)[:B]


def _reference(output, action, delta, prop, all_prop, regressed, hp, return_mean=True):
    """Plain-JAX reference mirroring the PyTorch forward."""
    B = output.shape[0]
    risk = -1.0 * delta
    chosen = output[jnp.arange(B), action]
    if hp['estimator_type'] == 'IPS':
        loss = risk * (chosen / prop)
    elif hp['estimator_type'] == 'RegressionExtrapolation':
        unsupp = (all_prop == 0).astype(output.dtype)
        loss = risk * (chosen / prop) - jnp.sum(regressed * output * unsupp, -1)
    elif hp['estimator_type'] == 'PolicyRestriction':
        loss = (risk + float(hp['k'])) * (chosen / prop) - float(hp['k'])
    return jnp.mean(loss) if return_mean else loss


def _make_inputs(key, B, A):
    k1, k2, k3, k4, k5, k6, k7 = jax.random.split(key, 7)
    output = jax.nn.softmax(jax.random.normal(k1, (B, A), jnp.float32), axis=-1)
    y = jnp.zeros((B,), jnp.float32)  # unused, kept for signature parity
    action = jax.random.randint(k2, (B,), 0, A, jnp.int32)
    delta = jax.random.normal(k3, (B,), jnp.float32)
    prop = jax.random.uniform(k4, (B,), jnp.float32, 0.1, 1.0)
    supp_mask = jax.random.bernoulli(k5, 0.7, (B, A)).astype(jnp.float32)
    all_prop = jax.random.uniform(k6, (B, A), jnp.float32, 0.1, 1.0) * supp_mask
    regressed = jax.random.normal(k7, (B, A), jnp.float32)
    return output, y, action, delta, prop, all_prop, regressed


if __name__ == "__main__":
    ok = True
    estimators = ('IPS', 'RegressionExtrapolation', 'PolicyRestriction')

    # Case 1: small single-tile batch.
    B, A = 8, 16
    inputs = _make_inputs(jax.random.PRNGKey(0), B, A)
    output, y, action, delta, prop, all_prop, regressed = inputs
    for est in estimators:
        hp = {'estimator_type': est, 'k': 0.5}
        for rmean in (True, False):
            got = custom_loss(output, y, action, delta, prop, all_prop, regressed,
                              hyper_params=hp, return_mean=rmean)
            got = jax.block_until_ready(got)
            want = _reference(output, action, delta, prop, all_prop, regressed,
                              hp, return_mean=rmean)
            if not jnp.allclose(got, want, rtol=1e-5, atol=1e-5):
                ok = False
                print(f"MISMATCH case1 {est} return_mean={rmean}")

    # Case 2: multi-tile batch with padding (B not a multiple of tile_b) and a
    # broadcast (1, A) regressed_rewards to exercise the resident-block path.
    B2, A2 = 40, 16
    inputs2 = _make_inputs(jax.random.PRNGKey(1), B2, A2)
    output2, y2, action2, delta2, prop2, all_prop2, regressed2 = inputs2
    regressed2_row = regressed2[0]                       # (A2,), broadcast over batch
    for est in estimators:
        hp = {'estimator_type': est, 'k': 0.25}
        for rmean in (True, False):
            got = custom_loss(output2, y2, action2, delta2, prop2, all_prop2,
                              regressed2_row, hyper_params=hp, return_mean=rmean,
                              tile_b=16)
            got = jax.block_until_ready(got)
            want = _reference(output2, action2, delta2, prop2, all_prop2,
                              jnp.broadcast_to(regressed2_row, (B2, A2)),
                              hp, return_mean=rmean)
            if not jnp.allclose(got, want, rtol=1e-5, atol=1e-5):
                ok = False
                print(f"MISMATCH case2 {est} return_mean={rmean}")

    if ok:
        print("KERNEL_OK")
</pallas_src>

<mosaic_0001>
module attributes {stable_mosaic.version = 11 : i64} {
  func.func @_custom_loss_kernel(%arg0: i32, %arg1: memref<8x16xf32, #tpu.memory_space<vmem>>, %arg2: memref<8x1xi32, #tpu.memory_space<vmem>>, %arg3: memref<8x1xf32, #tpu.memory_space<vmem>>, %arg4: memref<8x1xf32, #tpu.memory_space<vmem>>, %arg5: memref<1x1xf32, #tpu.memory_space<vmem>>, %arg6: memref<1x1xf32, #tpu.memory_space<vmem>>) attributes {dimension_semantics = [#tpu.dimension_semantics<arbitrary>], iteration_bounds = array<i64: 1>, scalar_prefetch = 0 : i64, scratch_operands = 1 : i64, tpu.core_type = #tpu.core_type<tc>, window_params = [{transform_indices = @transform_0, window_bounds = array<i64: 8, 16>}, {transform_indices = @transform_1, window_bounds = array<i64: 8, 1>}, {transform_indices = @transform_2, window_bounds = array<i64: 8, 1>}, {transform_indices = @transform_3, window_bounds = array<i64: 8, 1>}, {pipeline_mode = #tpu.pipeline_mode<synchronous>, transform_indices = @transform_4, window_bounds = array<i64: 1, 1>}]} {
    %c0 = arith.constant 0 : index
    %c0_0 = arith.constant 0 : index
    %0 = vector.load %arg1[%c0, %c0_0] : memref<8x16xf32, #tpu.memory_space<vmem>>, vector<8x16xf32>
    %c0_1 = arith.constant 0 : index
    %c0_2 = arith.constant 0 : index
    %1 = vector.load %arg2[%c0_1, %c0_2] : memref<8x1xi32, #tpu.memory_space<vmem>>, vector<8x1xi32>
    %c0_3 = arith.constant 0 : index
    %c0_4 = arith.constant 0 : index
    %2 = vector.load %arg3[%c0_3, %c0_4] : memref<8x1xf32, #tpu.memory_space<vmem>>, vector<8x1xf32>
    %c0_5 = arith.constant 0 : index
    %c0_6 = arith.constant 0 : index
    %3 = vector.load %arg4[%c0_5, %c0_6] : memref<8x1xf32, #tpu.memory_space<vmem>>, vector<8x1xf32>
    %cst = arith.constant -1.000000e+00 : f32
    %4 = vector.broadcast %cst : f32 to vector<8x1xf32>
    %5 = arith.mulf %4, %2 : vector<8x1xf32>
    %6 = tpu.iota {dimensions = array<i32: 1>} : vector<8x16xi32>
    %7 = vector.broadcast %1 : vector<8x1xi32> to vector<8x16xi32>
    %8 = arith.cmpi eq, %6, %7 : vector<8x16xi32>
    %9 = arith.extui %8 : vector<8x16xi1> to vector<8x16xi32>
    %10 = arith.sitofp %9 : vector<8x16xi32> to vector<8x16xf32>
    %11 = arith.mulf %0, %10 : vector<8x16xf32>
    %cst_7 = arith.constant dense<0.000000e+00> : vector<8xf32>
    %12 = vector.multi_reduction <add>, %11, %cst_7 [1] : vector<8x16xf32> to vector<8xf32>
    %13 = vector.shape_cast %12 : vector<8xf32> to vector<8x1xf32>
    %14 = tpu.reciprocal %3 : vector<8x1xf32> -> vector<8x1xf32>
    %15 = arith.mulf %13, %14 : vector<8x1xf32>
    %16 = arith.mulf %5, %15 : vector<8x1xf32>
    %c8_i32 = arith.constant 8 : i32
    %17 = arith.muli %arg0, %c8_i32 : i32
    %18 = tpu.iota {dimensions = array<i32: 0>} : vector<8x1xi32>
    %19 = vector.broadcast %17 : i32 to vector<8x1xi32>
    %20 = arith.addi %19, %18 : vector<8x1xi32>
    %c8_i32_8 = arith.constant 8 : i32
    %21 = vector.broadcast %c8_i32_8 : i32 to vector<8x1xi32>
    %22 = arith.cmpi slt, %20, %21 : vector<8x1xi32>
    %23 = arith.extui %22 : vector<8x1xi1> to vector<8x1xi32>
    %24 = arith.sitofp %23 : vector<8x1xi32> to vector<8x1xf32>
    %25 = arith.mulf %16, %24 : vector<8x1xf32>
    %26 = vector.shape_cast %25 : vector<8x1xf32> to vector<1x8x1xf32>
    %cst_9 = arith.constant dense<0.000000e+00> : vector<1xf32>
    %27 = vector.multi_reduction <add>, %26, %cst_9 [1, 2] : vector<1x8x1xf32> to vector<1xf32>
    %28 = vector.shape_cast %27 : vector<1xf32> to vector<1x1x1xf32>
    %29 = vector.extract %28[0, 0, 0] : f32 from vector<1x1x1xf32>
    %30 = vector.broadcast %29 : f32 to vector<1x1xf32>
    %c0_i32 = arith.constant 0 : i32
    %31 = arith.cmpi eq, %arg0, %c0_i32 : i32
    %32 = arith.extui %31 : i1 to i32
    %c0_i32_10 = arith.constant 0 : i32
    %33 = arith.cmpi ne, %32, %c0_i32_10 : i32
    scf.if %33 {
      %cst_17 = arith.constant 0.000000e+00 : f32
      %40 = vector.broadcast %cst_17 : f32 to vector<1x1xf32>
      %c0_18 = arith.constant 0 : index
      %c0_19 = arith.constant 0 : index
      %41 = vector.load %arg6[%c0_18, %c0_19] : memref<1x1xf32, #tpu.memory_space<vmem>>, vector<1x1xf32>
      tpu.vector_store %arg6[%c0_18, %c0_19], %40 {strides = array<i32>} : memref<1x1xf32, #tpu.memory_space<vmem>>, vector<1x1xf32>,
    } else {
    }
    %c0_11 = arith.constant 0 : index
    %c0_12 = arith.constant 0 : index
    %34 = vector.load %arg6[%c0_11, %c0_12] : memref<1x1xf32, #tpu.memory_space<vmem>>, vector<1x1xf32>
    %35 = arith.addf %34, %30 : vector<1x1xf32>
    %c0_13 = arith.constant 0 : index
    %c0_14 = arith.constant 0 : index
    %36 = vector.load %arg6[%c0_13, %c0_14] : memref<1x1xf32, #tpu.memory_space<vmem>>, vector<1x1xf32>
    tpu.vector_store %arg6[%c0_13, %c0_14], %35 {strides = array<i32>} : memref<1x1xf32, #tpu.memory_space<vmem>>, vector<1x1xf32>,
    %c0_i32_15 = arith.constant 0 : i32
    %37 = arith.cmpi eq, %arg0, %c0_i32_15 : i32
    %38 = arith.extui %37 : i1 to i32
    %c0_i32_16 = arith.constant 0 : i32
    %39 = arith.cmpi ne, %38, %c0_i32_16 : i32
    scf.if %39 {
      %c0_17 = arith.constant 0 : index
      %c0_18 = arith.constant 0 : index
      %40 = vector.load %arg6[%c0_17, %c0_18] : memref<1x1xf32, #tpu.memory_space<vmem>>, vector<1x1xf32>
      %cst_19 = arith.constant 1.250000e-01 : f32
      %41 = vector.broadcast %cst_19 : f32 to vector<1x1xf32>
      %42 = arith.mulf %40, %41 : vector<1x1xf32>
      %c0_20 = arith.constant 0 : index
      %c0_21 = arith.constant 0 : index
      %43 = vector.load %arg5[%c0_20, %c0_21] : memref<1x1xf32, #tpu.memory_space<vmem>>, vector<1x1xf32>
      tpu.vector_store %arg5[%c0_20, %c0_21], %42 {strides = array<i32>} : memref<1x1xf32, #tpu.memory_space<vmem>>, vector<1x1xf32>,
    } else {
    }
    return
  }
  func.func @transform_0(%arg0: i32) -> (i32, i32) {
    %c0_i32 = arith.constant 0 : i32
    %c0_i32_0 = arith.constant 0 : i32
    return %arg0, %c0_i32 : i32, i32
  }
  func.func @transform_1(%arg0: i32) -> (i32, i32) {
    %c0_i32 = arith.constant 0 : i32
    %c0_i32_0 = arith.constant 0 : i32
    return %arg0, %c0_i32 : i32, i32
  }
  func.func @transform_2(%arg0: i32) -> (i32, i32) {
    %c0_i32 = arith.constant 0 : i32
    %c0_i32_0 = arith.constant 0 : i32
    return %arg0, %c0_i32 : i32, i32
  }
  func.func @transform_3(%arg0: i32) -> (i32, i32) {
    %c0_i32 = arith.constant 0 : i32
    %c0_i32_0 = arith.constant 0 : i32
    return %arg0, %c0_i32 : i32, i32
  }
  func.func @transform_4(%arg0: i32) -> (i32, i32) {
    %c0_i32 = arith.constant 0 : i32
    %c0_i32_0 = arith.constant 0 : i32
    %c0_i32_1 = arith.constant 0 : i32
    return %c0_i32, %c0_i32_0 : i32, i32
  }
}

</mosaic_0001>

<bundles_post_ra>
// kernel: tpu_custom_call.1
= control target key start
LH: loop header
LB: loop body
LE: loop exit
PB: predicated region body
PF: predicated region fallthrough
CT: control target
= control target key end

     0   :  { %vm64_vm0 = vcmask 0   ;;  %s178_s0 = inlined_call_operand.vmem [shape: f32[8,16], index: 0, kind: input, shape index: {}]   ;;  %s179_s1 = inlined_call_operand.vmem [shape: s32[8,1], index: 1, kind: input, shape index: {}]   ;;  %s180_s2 = inlined_call_operand.vmem [shape: f32[8,1], index: 2, kind: input, shape index: {}]   ;;  %s181_s3 = inlined_call_operand.vmem [shape: f32[8,1], index: 3, kind: input, shape index: {}]   ;;  %s182_s4 = inlined_call_operand.hbm [shape: f32[1,1], index: 4, kind: output, shape index: {}]  }
   0x1   :  { %v19_v0 = vld [vmem:[%s179_s1] sm:$0xff] }
   0x2   :  { %9 = vsyncpa [#allocation4], 0  ;;  %v123_v1 = vmov 0   ;;  %v124_v2 = vmov 0.0   ;;  %v23_v3 = vlaneseq  ;;  %v18_v6 = vld [vmem:[%s178_s0] sm:$0xff]  ;;  %vm32_vm2 = vcmask 130048  }
   0x3   :  { %96 = vset.pattern.permute.xlu0 %v123_v1  ;;  %65 = vst.msk [vmem:[#allocation2] sm:$0x1] %vm64_vm0, %v124_v2  ;;  %v21_v10 = vld [vmem:[%s181_s3] sm:$0xff]  ;;  %vm48_vm3 = vcmask 7168  }
   0x4   :  { %26 = vperm.xlu0 %96, %v19_v0   ;;  %v24_v4 = vand.u32 127, %v23_v3  ;;  %97 = vrcp.f32 %v21_v10  ;;  %v20_v11 = vld [vmem:[%s180_s2] sm:$0xff]  ;;  %s125_s2 = smov [#allocation3]  }
   0x5   :  { %v22_v13 = vmul.f32 -1.0, %v20_v11  ;;  %s82_s3 = sshll.u32 %s125_s2, 4  ;;  %s83_s3 = int_to_ptr.vmem [resolvable:$true] %s82_s3 }
   0x6   :  { %s99_s22 = scalar_lea.vmem %s83_s3, 16  ;;  %s103_s23 = scalar_lea.vmem %s83_s3, 32 }
   0x7   :  { %p100_p0 = scmp.ne.s32.totalorder %s83_s3, %s99_s22  ;;  %p104_p1 = scmp.lt.s32.totalorder %s83_s3, %s83_s3 }
   0x8   :  { %p105_p2 = scmp.lt.s32.totalorder %s103_s23, %s99_s22 }
   0xa   :  { %v66_v25 = vld [vmem:[#allocation2] sm:$0x1]  ;;  %p106_p3 = por %p105_p2, %p104_p1 }
   0xc   :  { %p107_p4 = pnand %p106_p3, %p100_p0 }
   0xe   :  { %v98_v12 = vpop.eup %97 }
  0x83   :  { %v27_v5 = vpop.permute.xlu0 %26 }
  0x84   :  { %vm28_vm1 = vcmp.eq.s32.totalorder %v24_v4, %v27_v5 }
  0x85   :  { %v90_v7 = vsel %vm28_vm1, 1.0, %v124_v2 }
  0x86   :  { %v31_v8 = vmul.f32 %v90_v7, %v18_v6 }
  0x88   :  { %v33_v9 = vsel %vm32_vm2, %v31_v8, 0.0 }
  0x89   :  { %34 = vadd.xlane.f32.xlu0 %v33_v9 }
 0x116   :  { %v35_v14 = vpop.xlane.xlu0 %34 }
 0x117   :  { %v37_v15 = vmul.f32 %v98_v12, %v35_v14 }
 0x119   :  { %v38_v16 = vmul.f32 %v37_v15, %v22_v13 }
 0x11b   :  { %v49_v17 = vsel %vm48_vm3, %v38_v16, 0.0 }
 0x11c   :  { %50 = vadd.xlane.f32.xlu1 %v49_v17 }
 0x1a9   :  { %v51_v18 = vpop.xlane.xlu1 %50 }
 0x1aa   :  { %v52_v19 = vrot.slane %v51_v18, 4 }
 0x1ac   :  { %v53_v20 = vadd.f32 %v52_v19, %v51_v18 }
 0x1ae   :  { %v54_v21 = vrot.slane %v53_v20, 2 }
 0x1b0   :  { %v55_v22 = vadd.f32 %v54_v21, %v53_v20 }
 0x1b2   :  { %v56_v23 = vrot.slane %v55_v22, 1 }
 0x1b4   :  { %v57_v24 = vadd.f32 %v56_v23, %v55_v22 }
 0x1b6   :  { %91 = vpush %v57_v24 }
 0x1e7   :  { %s92_s0 = spop %91 }
 0x1e8   :  { %v59_v26 = vstv %s92_s0 }
 0x1e9   :  { %v67_v27 = vadd.f32 %v66_v25, %v59_v26 }
 0x1eb   :  { %69 = vst.msk [vmem:[#allocation2] sm:$0x1] %vm64_vm0, %v67_v27 }
 0x1f2   :  { %v73_v28 = vld [vmem:[#allocation2] sm:$0x1] }
 0x1f3   :  { %v74_v29 = vmul.f32 0.125, %v73_v28 }
 0x1f5   :  { %75 = vst.msk [vmem:[#allocation3] sm:$0x1] %vm64_vm0, %v74_v29 }
 0x1f6   :  { %110 = shalt.err (!%p107_p4)
}
 0x1f7   :  { %s111_s26 = scalar_lea.hbm %s182_s4, 16 }
 0x1f8   :  { %p112_p5 = scmp.ne.s32.totalorder %s182_s4, %s111_s26  ;;  %p115_p6 = scmp.lt.u32.totalorder %s111_s26, %s182_s4 }
 0x1fa   :  { %p117_p7 = pnand %p115_p6, %p112_p5 }
 0x1fc   :  { %120 = shalt.err (!%p117_p7)
}
 0x1fd   :  { %85 = dma.vmem_to_hbm [thread:$0]  %s83_s3, 16, %s182_s4, [#allocation4]  }
 0x1fe   :  { %121 = dma.done.wait [#allocation4], 16  }
 0x1ff   :  { %122 = vsyncadd [#allocation4], 4294967280 }
 0x200   :  { %89 = vsyncpa [#allocation4], 1 }

</bundles_post_ra>
